<compile_context>
chip_gen: v7x
topology: tpu7x:2x2x1
jax: 0.10.0
libtpu: 0.0.40
codegen_flags: <defaults>
</compile_context>

<pallas_src>
import functools

import jax
import jax.numpy as jnp
from jax.experimental import pallas as pl
from jax.experimental.pallas import tpu as pltpu

_SUBLANE = 8


# --------------------------------------------------------------------------
# Pallas kernel: fused embedding gather + Elman RNN, last hidden state only.
# --------------------------------------------------------------------------
def rnn_last_kernel(ids_ref, emb_ref, wih_t_ref, whh_t_ref, o_ref, x_scr):
    """ids_ref: (B, T) int32 in SMEM; emb_ref: (V, 1, D) f32 in VMEM;
    wih_t_ref: (D, H); whh_t_ref: (H, H); o_ref: (B, H) == h_T;
    x_scr: (T*BP, D) VMEM scratch with BP = B rounded up to 8 sublanes."""
    b, t_steps = ids_ref.shape
    h_dim = o_ref.shape[1]
    bp = x_scr.shape[0] // t_steps

    # Phase 0a: fused embedding gather. ids are scalar reads from SMEM, the
    # table row is a dynamic leading-dim read from VMEM; rows land in a
    # time-major, 8-sublane-aligned scratch slab. Padded rows are zeroed.
    x_scr[...] = jnp.zeros_like(x_scr)
    for t in range(t_steps):                      # static unroll (T tiny)
        for i in range(b):
            idx = ids_ref[i, t]                   # SMEM scalar read
            row = emb_ref[idx]                    # (1, D) dynamic row gather
            x_scr[t * bp + i: t * bp + i + 1, :] = row

    # Phase 0b: hoisted input projection — one MXU matmul covering all
    # timesteps instead of T tiny matmuls on the serial critical path.
    xw = jnp.dot(x_scr[...], wih_t_ref[...],
                 preferred_element_type=jnp.float32)          # (T*BP, H)

    w_hh_t = whh_t_ref[...]                                   # load once

    # Phase 1: serial recurrence, fully unrolled (h_0 = 0 as in nn.RNN).
    # Each step's xw slice is an 8-sublane-aligned slab; only the small
    # (BP,H)@(H,H) matmul + tanh remain on the h_{t-1} dependency chain.
    h = jnp.zeros((bp, h_dim), dtype=jnp.float32)
    for t in range(t_steps):
        h = jnp.tanh(
            xw[t * bp:(t + 1) * bp, :]
            + jnp.dot(h, w_hh_t, preferred_element_type=jnp.float32)
        )

    # Single store of the final hidden state (== Y_pred[:, -1, :]).
    o_ref[...] = h[:b, :].astype(o_ref.dtype)


def rnn_last_hidden(x_ids, emb_v1d, w_ih_t, w_hh_t):
    """x_ids: (B, T) int32; emb_v1d: (V, 1, D) f32; returns h_T (B, H) f32."""
    batch, seq = x_ids.shape
    d_in, h_dim = w_ih_t.shape
    bp = max(_SUBLANE, ((batch + _SUBLANE - 1) // _SUBLANE) * _SUBLANE)
    return pl.pallas_call(
        rnn_last_kernel,
        out_shape=jax.ShapeDtypeStruct((batch, h_dim), jnp.float32),
        in_specs=[
            pl.BlockSpec(memory_space=pltpu.MemorySpace.SMEM),   # ids (scalars)
            pl.BlockSpec(memory_space=pltpu.MemorySpace.VMEM),   # embedding
            pl.BlockSpec(memory_space=pltpu.MemorySpace.VMEM),   # W_ih^T
            pl.BlockSpec(memory_space=pltpu.MemorySpace.VMEM),   # W_hh^T
        ],
        out_specs=pl.BlockSpec(memory_space=pltpu.MemorySpace.VMEM),
        scratch_shapes=[pltpu.VMEM((seq * bp, d_in), jnp.float32)],
    )(x_ids, emb_v1d, w_ih_t, w_hh_t)


# --------------------------------------------------------------------------
# Params + full forward matching MyTorchModule.forward
# --------------------------------------------------------------------------
def make_params(s_vocab_num, s_latin_dim, rnn_input_size, rnn_hidden_size, seed=0):
    k0, k1, k2 = jax.random.split(jax.random.PRNGKey(seed), 3)
    # nn.Embedding init: N(0, 1); padding_idx=0 row zeroed at init.
    emb = jax.random.normal(k0, (s_vocab_num, s_latin_dim), dtype=jnp.float32)
    emb = emb.at[0].set(0.0)
    # nn.RNN init: U(-1/sqrt(H), 1/sqrt(H)), bias=False (PyTorch layout (H,D)/(H,H)).
    bound = 1.0 / jnp.sqrt(jnp.float32(rnn_hidden_size))
    w_ih = jax.random.uniform(k1, (rnn_hidden_size, rnn_input_size),
                              minval=-bound, maxval=bound, dtype=jnp.float32)
    w_hh = jax.random.uniform(k2, (rnn_hidden_size, rnn_hidden_size),
                              minval=-bound, maxval=bound, dtype=jnp.float32)
    return {
        # (V, 1, D): unit axis so the in-kernel dynamic gather indexes a batch dim.
        "embedding": emb.reshape(s_vocab_num, 1, s_latin_dim),
        # Pre-transposed ONCE here (outside the jitted forward) -> MXU-native layout.
        "w_ih_t": jnp.transpose(w_ih),   # (D, H)
        "w_hh_t": jnp.transpose(w_hh),   # (H, H)
    }


@functools.partial(jax.jit, static_argnames=("with_loss",))
def my_module_forward(params, x_ids, y=None, *, with_loss=False):
    # Everything up to the last hidden state is one fused Pallas kernel:
    # embedding gather + input projection + unrolled recurrence.
    logits = rnn_last_hidden(x_ids, params["embedding"],
                             params["w_ih_t"], params["w_hh_t"])      # (B, H)
    if not with_loss:
        return logits
    # nn.functional.cross_entropy with integer targets, mean reduction
    # (kept as thin JAX glue; cold path).
    lse = jax.nn.logsumexp(logits, axis=-1)
    picked = jnp.take_along_axis(logits, y[:, None], axis=-1)[:, 0]
    return jnp.mean(lse - picked)


if __name__ == "__main__":
    # Small shapes consistent with the module.
    s_vocab_num = 20
    s_latin_dim = 32       # embedding dim == RNN input size
    rnn_input_size = 32
    rnn_hidden_size = 32
    batch, seq = 2, 8

    params = make_params(s_vocab_num, s_latin_dim, rnn_input_size,
                         rnn_hidden_size, seed=0)

    key = jax.random.PRNGKey(0)
    kx, ky = jax.random.split(key)
    x_ids = jax.random.randint(kx, (batch, seq), 0, s_vocab_num, dtype=jnp.int32)
    y_tgt = jax.random.randint(ky, (batch,), 0, rnn_hidden_size, dtype=jnp.int32)

    # Y_ is None branch: last-timestep hidden state (B, H).
    out = my_module_forward(params, x_ids)
    out = jax.block_until_ready(out)
    assert out.shape == (batch, rnn_hidden_size)

    # Y_ provided branch: scalar cross-entropy loss.
    loss = my_module_forward(params, x_ids, y_tgt, with_loss=True)
    loss = jax.block_until_ready(loss)
    assert loss.shape == ()

    print("KERNEL_OK")
</pallas_src>

<mosaic_0001>
module attributes {stable_mosaic.version = 11 : i64} {
  func.func @rnn_last_kernel(%arg0: memref<2x8xi32, #tpu.memory_space<smem>>, %arg1: memref<20x1x32xf32, #tpu.memory_space<vmem>>, %arg2: memref<32x32xf32, #tpu.memory_space<vmem>>, %arg3: memref<32x32xf32, #tpu.memory_space<vmem>>, %arg4: memref<2x32xf32, #tpu.memory_space<vmem>>, %arg5: memref<64x32xf32, #tpu.memory_space<vmem>>) attributes {dimension_semantics = [], scalar_prefetch = 0 : i64, scratch_operands = 1 : i64, tpu.core_type = #tpu.core_type<tc>} {
    %cst = arith.constant 0.000000e+00 : f32
    %0 = vector.broadcast %cst : f32 to vector<64x32xf32>
    %c0 = arith.constant 0 : index
    %c0_0 = arith.constant 0 : index
    %1 = vector.load %arg5[%c0, %c0_0] : memref<64x32xf32, #tpu.memory_space<vmem>>, vector<64x32xf32>
    tpu.vector_store %arg5[%c0, %c0_0], %0 {strides = array<i32>} : memref<64x32xf32, #tpu.memory_space<vmem>>, vector<64x32xf32>,
    %c0_1 = arith.constant 0 : index
    %c0_2 = arith.constant 0 : index
    %2 = memref.load %arg0[%c0_1, %c0_2] : memref<2x8xi32, #tpu.memory_space<smem>>
    %3 = arith.index_cast %2 : i32 to index
    %c0_3 = arith.constant 0 : index
    %c0_4 = arith.constant 0 : index
    %4 = vector.load %arg1[%3, %c0_3, %c0_4] : memref<20x1x32xf32, #tpu.memory_space<vmem>>, vector<1x1x32xf32>
    %5 = vector.shape_cast %4 : vector<1x1x32xf32> to vector<1x32xf32>
    %c0_5 = arith.constant 0 : index
    %c0_6 = arith.constant 0 : index
    %6 = vector.load %arg5[%c0_5, %c0_6] : memref<64x32xf32, #tpu.memory_space<vmem>>, vector<1x32xf32>
    tpu.vector_store %arg5[%c0_5, %c0_6], %5 {strides = array<i32>} : memref<64x32xf32, #tpu.memory_space<vmem>>, vector<1x32xf32>,
    %c1 = arith.constant 1 : index
    %c0_7 = arith.constant 0 : index
    %7 = memref.load %arg0[%c1, %c0_7] : memref<2x8xi32, #tpu.memory_space<smem>>
    %8 = arith.index_cast %7 : i32 to index
    %c0_8 = arith.constant 0 : index
    %c0_9 = arith.constant 0 : index
    %9 = vector.load %arg1[%8, %c0_8, %c0_9] : memref<20x1x32xf32, #tpu.memory_space<vmem>>, vector<1x1x32xf32>
    %10 = vector.shape_cast %9 : vector<1x1x32xf32> to vector<1x32xf32>
    %c1_10 = arith.constant 1 : index
    %c0_11 = arith.constant 0 : index
    %11 = vector.load %arg5[%c1_10, %c0_11] : memref<64x32xf32, #tpu.memory_space<vmem>>, vector<1x32xf32>
    tpu.vector_store %arg5[%c1_10, %c0_11], %10 {strides = array<i32>} : memref<64x32xf32, #tpu.memory_space<vmem>>, vector<1x32xf32>,
    %c0_12 = arith.constant 0 : index
    %c1_13 = arith.constant 1 : index
    %12 = memref.load %arg0[%c0_12, %c1_13] : memref<2x8xi32, #tpu.memory_space<smem>>
    %13 = arith.index_cast %12 : i32 to index
    %c0_14 = arith.constant 0 : index
    %c0_15 = arith.constant 0 : index
    %14 = vector.load %arg1[%13, %c0_14, %c0_15] : memref<20x1x32xf32, #tpu.memory_space<vmem>>, vector<1x1x32xf32>
    %15 = vector.shape_cast %14 : vector<1x1x32xf32> to vector<1x32xf32>
    %c8 = arith.constant 8 : index
    %c0_16 = arith.constant 0 : index
    %16 = vector.load %arg5[%c8, %c0_16] : memref<64x32xf32, #tpu.memory_space<vmem>>, vector<1x32xf32>
    tpu.vector_store %arg5[%c8, %c0_16], %15 {strides = array<i32>} : memref<64x32xf32, #tpu.memory_space<vmem>>, vector<1x32xf32>,
    %c1_17 = arith.constant 1 : index
    %c1_18 = arith.constant 1 : index
    %17 = memref.load %arg0[%c1_17, %c1_18] : memref<2x8xi32, #tpu.memory_space<smem>>
    %18 = arith.index_cast %17 : i32 to index
    %c0_19 = arith.constant 0 : index
    %c0_20 = arith.constant 0 : index
    %19 = vector.load %arg1[%18, %c0_19, %c0_20] : memref<20x1x32xf32, #tpu.memory_space<vmem>>, vector<1x1x32xf32>
    %20 = vector.shape_cast %19 : vector<1x1x32xf32> to vector<1x32xf32>
    %c9 = arith.constant 9 : index
    %c0_21 = arith.constant 0 : index
    %21 = vector.load %arg5[%c9, %c0_21] : memref<64x32xf32, #tpu.memory_space<vmem>>, vector<1x32xf32>
    tpu.vector_store %arg5[%c9, %c0_21], %20 {strides = array<i32>} : memref<64x32xf32, #tpu.memory_space<vmem>>, vector<1x32xf32>,
    %c0_22 = arith.constant 0 : index
    %c2 = arith.constant 2 : index
    %22 = memref.load %arg0[%c0_22, %c2] : memref<2x8xi32, #tpu.memory_space<smem>>
    %23 = arith.index_cast %22 : i32 to index
    %c0_23 = arith.constant 0 : index
    %c0_24 = arith.constant 0 : index
    %24 = vector.load %arg1[%23, %c0_23, %c0_24] : memref<20x1x32xf32, #tpu.memory_space<vmem>>, vector<1x1x32xf32>
    %25 = vector.shape_cast %24 : vector<1x1x32xf32> to vector<1x32xf32>
    %c16 = arith.constant 16 : index
    %c0_25 = arith.constant 0 : index
    %26 = vector.load %arg5[%c16, %c0_25] : memref<64x32xf32, #tpu.memory_space<vmem>>, vector<1x32xf32>
    tpu.vector_store %arg5[%c16, %c0_25], %25 {strides = array<i32>} : memref<64x32xf32, #tpu.memory_space<vmem>>, vector<1x32xf32>,
    %c1_26 = arith.constant 1 : index
    %c2_27 = arith.constant 2 : index
    %27 = memref.load %arg0[%c1_26, %c2_27] : memref<2x8xi32, #tpu.memory_space<smem>>
    %28 = arith.index_cast %27 : i32 to index
    %c0_28 = arith.constant 0 : index
    %c0_29 = arith.constant 0 : index
    %29 = vector.load %arg1[%28, %c0_28, %c0_29] : memref<20x1x32xf32, #tpu.memory_space<vmem>>, vector<1x1x32xf32>
    %30 = vector.shape_cast %29 : vector<1x1x32xf32> to vector<1x32xf32>
    %c17 = arith.constant 17 : index
    %c0_30 = arith.constant 0 : index
    %31 = vector.load %arg5[%c17, %c0_30] : memref<64x32xf32, #tpu.memory_space<vmem>>, vector<1x32xf32>
    tpu.vector_store %arg5[%c17, %c0_30], %30 {strides = array<i32>} : memref<64x32xf32, #tpu.memory_space<vmem>>, vector<1x32xf32>,
    %c0_31 = arith.constant 0 : index
    %c3 = arith.constant 3 : index
    %32 = memref.load %arg0[%c0_31, %c3] : memref<2x8xi32, #tpu.memory_space<smem>>
    %33 = arith.index_cast %32 : i32 to index
    %c0_32 = arith.constant 0 : index
    %c0_33 = arith.constant 0 : index
    %34 = vector.load %arg1[%33, %c0_32, %c0_33] : memref<20x1x32xf32, #tpu.memory_space<vmem>>, vector<1x1x32xf32>
    %35 = vector.shape_cast %34 : vector<1x1x32xf32> to vector<1x32xf32>
    %c24 = arith.constant 24 : index
    %c0_34 = arith.constant 0 : index
    %36 = vector.load %arg5[%c24, %c0_34] : memref<64x32xf32, #tpu.memory_space<vmem>>, vector<1x32xf32>
    tpu.vector_store %arg5[%c24, %c0_34], %35 {strides = array<i32>} : memref<64x32xf32, #tpu.memory_space<vmem>>, vector<1x32xf32>,
    %c1_35 = arith.constant 1 : index
    %c3_36 = arith.constant 3 : index
    %37 = memref.load %arg0[%c1_35, %c3_36] : memref<2x8xi32, #tpu.memory_space<smem>>
    %38 = arith.index_cast %37 : i32 to index
    %c0_37 = arith.constant 0 : index
    %c0_38 = arith.constant 0 : index
    %39 = vector.load %arg1[%38, %c0_37, %c0_38] : memref<20x1x32xf32, #tpu.memory_space<vmem>>, vector<1x1x32xf32>
    %40 = vector.shape_cast %39 : vector<1x1x32xf32> to vector<1x32xf32>
    %c25 = arith.constant 25 : index
    %c0_39 = arith.constant 0 : index
    %41 = vector.load %arg5[%c25, %c0_39] : memref<64x32xf32, #tpu.memory_space<vmem>>, vector<1x32xf32>
    tpu.vector_store %arg5[%c25, %c0_39], %40 {strides = array<i32>} : memref<64x32xf32, #tpu.memory_space<vmem>>, vector<1x32xf32>,
    %c0_40 = arith.constant 0 : index
    %c4 = arith.constant 4 : index
    %42 = memref.load %arg0[%c0_40, %c4] : memref<2x8xi32, #tpu.memory_space<smem>>
    %43 = arith.index_cast %42 : i32 to index
    %c0_41 = arith.constant 0 : index
    %c0_42 = arith.constant 0 : index
    %44 = vector.load %arg1[%43, %c0_41, %c0_42] : memref<20x1x32xf32, #tpu.memory_space<vmem>>, vector<1x1x32xf32>
    %45 = vector.shape_cast %44 : vector<1x1x32xf32> to vector<1x32xf32>
    %c32 = arith.constant 32 : index
    %c0_43 = arith.constant 0 : index
    %46 = vector.load %arg5[%c32, %c0_43] : memref<64x32xf32, #tpu.memory_space<vmem>>, vector<1x32xf32>
    tpu.vector_store %arg5[%c32, %c0_43], %45 {strides = array<i32>} : memref<64x32xf32, #tpu.memory_space<vmem>>, vector<1x32xf32>,
    %c1_44 = arith.constant 1 : index
    %c4_45 = arith.constant 4 : index
    %47 = memref.load %arg0[%c1_44, %c4_45] : memref<2x8xi32, #tpu.memory_space<smem>>
    %48 = arith.index_cast %47 : i32 to index
    %c0_46 = arith.constant 0 : index
    %c0_47 = arith.constant 0 : index
    %49 = vector.load %arg1[%48, %c0_46, %c0_47] : memref<20x1x32xf32, #tpu.memory_space<vmem>>, vector<1x1x32xf32>
    %50 = vector.shape_cast %49 : vector<1x1x32xf32> to vector<1x32xf32>
    %c33 = arith.constant 33 : index
    %c0_48 = arith.constant 0 : index
    %51 = vector.load %arg5[%c33, %c0_48] : memref<64x32xf32, #tpu.memory_space<vmem>>, vector<1x32xf32>
    tpu.vector_store %arg5[%c33, %c0_48], %50 {strides = array<i32>} : memref<64x32xf32, #tpu.memory_space<vmem>>, vector<1x32xf32>,
    %c0_49 = arith.constant 0 : index
    %c5 = arith.constant 5 : index
    %52 = memref.load %arg0[%c0_49, %c5] : memref<2x8xi32, #tpu.memory_space<smem>>
    %53 = arith.index_cast %52 : i32 to index
    %c0_50 = arith.constant 0 : index
    %c0_51 = arith.constant 0 : index
    %54 = vector.load %arg1[%53, %c0_50, %c0_51] : memref<20x1x32xf32, #tpu.memory_space<vmem>>, vector<1x1x32xf32>
    %55 = vector.shape_cast %54 : vector<1x1x32xf32> to vector<1x32xf32>
    %c40 = arith.constant 40 : index
    %c0_52 = arith.constant 0 : index
    %56 = vector.load %arg5[%c40, %c0_52] : memref<64x32xf32, #tpu.memory_space<vmem>>, vector<1x32xf32>
    tpu.vector_store %arg5[%c40, %c0_52], %55 {strides = array<i32>} : memref<64x32xf32, #tpu.memory_space<vmem>>, vector<1x32xf32>,
    %c1_53 = arith.constant 1 : index
    %c5_54 = arith.constant 5 : index
    %57 = memref.load %arg0[%c1_53, %c5_54] : memref<2x8xi32, #tpu.memory_space<smem>>
    %58 = arith.index_cast %57 : i32 to index
    %c0_55 = arith.constant 0 : index
    %c0_56 = arith.constant 0 : index
    %59 = vector.load %arg1[%58, %c0_55, %c0_56] : memref<20x1x32xf32, #tpu.memory_space<vmem>>, vector<1x1x32xf32>
    %60 = vector.shape_cast %59 : vector<1x1x32xf32> to vector<1x32xf32>
    %c41 = arith.constant 41 : index
    %c0_57 = arith.constant 0 : index
    %61 = vector.load %arg5[%c41, %c0_57] : memref<64x32xf32, #tpu.memory_space<vmem>>, vector<1x32xf32>
    tpu.vector_store %arg5[%c41, %c0_57], %60 {strides = array<i32>} : memref<64x32xf32, #tpu.memory_space<vmem>>, vector<1x32xf32>,
    %c0_58 = arith.constant 0 : index
    %c6 = arith.constant 6 : index
    %62 = memref.load %arg0[%c0_58, %c6] : memref<2x8xi32, #tpu.memory_space<smem>>
    %63 = arith.index_cast %62 : i32 to index
    %c0_59 = arith.constant 0 : index
    %c0_60 = arith.constant 0 : index
    %64 = vector.load %arg1[%63, %c0_59, %c0_60] : memref<20x1x32xf32, #tpu.memory_space<vmem>>, vector<1x1x32xf32>
    %65 = vector.shape_cast %64 : vector<1x1x32xf32> to vector<1x32xf32>
    %c48 = arith.constant 48 : index
    %c0_61 = arith.constant 0 : index
    %66 = vector.load %arg5[%c48, %c0_61] : memref<64x32xf32, #tpu.memory_space<vmem>>, vector<1x32xf32>
    tpu.vector_store %arg5[%c48, %c0_61], %65 {strides = array<i32>} : memref<64x32xf32, #tpu.memory_space<vmem>>, vector<1x32xf32>,
    %c1_62 = arith.constant 1 : index
    %c6_63 = arith.constant 6 : index
    %67 = memref.load %arg0[%c1_62, %c6_63] : memref<2x8xi32, #tpu.memory_space<smem>>
    %68 = arith.index_cast %67 : i32 to index
    %c0_64 = arith.constant 0 : index
    %c0_65 = arith.constant 0 : index
    %69 = vector.load %arg1[%68, %c0_64, %c0_65] : memref<20x1x32xf32, #tpu.memory_space<vmem>>, vector<1x1x32xf32>
    %70 = vector.shape_cast %69 : vector<1x1x32xf32> to vector<1x32xf32>
    %c49 = arith.constant 49 : index
    %c0_66 = arith.constant 0 : index
    %71 = vector.load %arg5[%c49, %c0_66] : memref<64x32xf32, #tpu.memory_space<vmem>>, vector<1x32xf32>
    tpu.vector_store %arg5[%c49, %c0_66], %70 {strides = array<i32>} : memref<64x32xf32, #tpu.memory_space<vmem>>, vector<1x32xf32>,
    %c0_67 = arith.constant 0 : index
    %c7 = arith.constant 7 : index
    %72 = memref.load %arg0[%c0_67, %c7] : memref<2x8xi32, #tpu.memory_space<smem>>
    %73 = arith.index_cast %72 : i32 to index
    %c0_68 = arith.constant 0 : index
    %c0_69 = arith.constant 0 : index
    %74 = vector.load %arg1[%73, %c0_68, %c0_69] : memref<20x1x32xf32, #tpu.memory_space<vmem>>, vector<1x1x32xf32>
    %75 = vector.shape_cast %74 : vector<1x1x32xf32> to vector<1x32xf32>
    %c56 = arith.constant 56 : index
    %c0_70 = arith.constant 0 : index
    %76 = vector.load %arg5[%c56, %c0_70] : memref<64x32xf32, #tpu.memory_space<vmem>>, vector<1x32xf32>
    tpu.vector_store %arg5[%c56, %c0_70], %75 {strides = array<i32>} : memref<64x32xf32, #tpu.memory_space<vmem>>, vector<1x32xf32>,
    %c1_71 = arith.constant 1 : index
    %c7_72 = arith.constant 7 : index
    %77 = memref.load %arg0[%c1_71, %c7_72] : memref<2x8xi32, #tpu.memory_space<smem>>
    %78 = arith.index_cast %77 : i32 to index
    %c0_73 = arith.constant 0 : index
    %c0_74 = arith.constant 0 : index
    %79 = vector.load %arg1[%78, %c0_73, %c0_74] : memref<20x1x32xf32, #tpu.memory_space<vmem>>, vector<1x1x32xf32>
    %80 = vector.shape_cast %79 : vector<1x1x32xf32> to vector<1x32xf32>
    %c57 = arith.constant 57 : index
    %c0_75 = arith.constant 0 : index
    %81 = vector.load %arg5[%c57, %c0_75] : memref<64x32xf32, #tpu.memory_space<vmem>>, vector<1x32xf32>
    tpu.vector_store %arg5[%c57, %c0_75], %80 {strides = array<i32>} : memref<64x32xf32, #tpu.memory_space<vmem>>, vector<1x32xf32>,
    %c0_76 = arith.constant 0 : index
    %c0_77 = arith.constant 0 : index
    %82 = vector.load %arg5[%c0_76, %c0_77] : memref<64x32xf32, #tpu.memory_space<vmem>>, vector<64x32xf32>
    %c0_78 = arith.constant 0 : index
    %c0_79 = arith.constant 0 : index
    %83 = vector.load %arg2[%c0_78, %c0_79] : memref<32x32xf32, #tpu.memory_space<vmem>>, vector<32x32xf32>
    %cst_80 = arith.constant dense<0.000000e+00> : vector<64x32xf32>
    %84 = tpu.matmul %82, %83, %cst_80 {dimension_numbers = #tpu.dot_dimension_numbers<[1], [0], [0], [1], [0, 0, 1, 1], [], []>} : vector<64x32xf32>, vector<32x32xf32>, vector<64x32xf32> -> vector<64x32xf32>
    %c0_81 = arith.constant 0 : index
    %c0_82 = arith.constant 0 : index
    %85 = vector.load %arg3[%c0_81, %c0_82] : memref<32x32xf32, #tpu.memory_space<vmem>>, vector<32x32xf32>
    %cst_83 = arith.constant 0.000000e+00 : f32
    %86 = vector.broadcast %cst_83 : f32 to vector<8x32xf32>
    %87 = vector.extract_strided_slice %84 {offsets = [0, 0], sizes = [8, 32], strides = [1, 1]} : vector<64x32xf32> to vector<8x32xf32>
    %cst_84 = arith.constant dense<0.000000e+00> : vector<8x32xf32>
    %88 = tpu.matmul %86, %85, %cst_84 {dimension_numbers = #tpu.dot_dimension_numbers<[1], [0], [0], [1], [0, 0, 1, 1], [], []>} : vector<8x32xf32>, vector<32x32xf32>, vector<8x32xf32> -> vector<8x32xf32>
    %89 = arith.addf %87, %88 : vector<8x32xf32>
    %90 = math.tanh %89 : vector<8x32xf32>
    %91 = vector.extract_strided_slice %84 {offsets = [8, 0], sizes = [8, 32], strides = [1, 1]} : vector<64x32xf32> to vector<8x32xf32>
    %cst_85 = arith.constant dense<0.000000e+00> : vector<8x32xf32>
    %92 = tpu.matmul %90, %85, %cst_85 {dimension_numbers = #tpu.dot_dimension_numbers<[1], [0], [0], [1], [0, 0, 1, 1], [], []>} : vector<8x32xf32>, vector<32x32xf32>, vector<8x32xf32> -> vector<8x32xf32>
    %93 = arith.addf %91, %92 : vector<8x32xf32>
    %94 = math.tanh %93 : vector<8x32xf32>
    %95 = vector.extract_strided_slice %84 {offsets = [16, 0], sizes = [8, 32], strides = [1, 1]} : vector<64x32xf32> to vector<8x32xf32>
    %cst_86 = arith.constant dense<0.000000e+00> : vector<8x32xf32>
    %96 = tpu.matmul %94, %85, %cst_86 {dimension_numbers = #tpu.dot_dimension_numbers<[1], [0], [0], [1], [0, 0, 1, 1], [], []>} : vector<8x32xf32>, vector<32x32xf32>, vector<8x32xf32> -> vector<8x32xf32>
    %97 = arith.addf %95, %96 : vector<8x32xf32>
    %98 = math.tanh %97 : vector<8x32xf32>
    %99 = vector.extract_strided_slice %84 {offsets = [24, 0], sizes = [8, 32], strides = [1, 1]} : vector<64x32xf32> to vector<8x32xf32>
    %cst_87 = arith.constant dense<0.000000e+00> : vector<8x32xf32>
    %100 = tpu.matmul %98, %85, %cst_87 {dimension_numbers = #tpu.dot_dimension_numbers<[1], [0], [0], [1], [0, 0, 1, 1], [], []>} : vector<8x32xf32>, vector<32x32xf32>, vector<8x32xf32> -> vector<8x32xf32>
    %101 = arith.addf %99, %100 : vector<8x32xf32>
    %102 = math.tanh %101 : vector<8x32xf32>
    %103 = vector.extract_strided_slice %84 {offsets = [32, 0], sizes = [8, 32], strides = [1, 1]} : vector<64x32xf32> to vector<8x32xf32>
    %cst_88 = arith.constant dense<0.000000e+00> : vector<8x32xf32>
    %104 = tpu.matmul %102, %85, %cst_88 {dimension_numbers = #tpu.dot_dimension_numbers<[1], [0], [0], [1], [0, 0, 1, 1], [], []>} : vector<8x32xf32>, vector<32x32xf32>, vector<8x32xf32> -> vector<8x32xf32>
    %105 = arith.addf %103, %104 : vector<8x32xf32>
    %106 = math.tanh %105 : vector<8x32xf32>
    %107 = vector.extract_strided_slice %84 {offsets = [40, 0], sizes = [8, 32], strides = [1, 1]} : vector<64x32xf32> to vector<8x32xf32>
    %cst_89 = arith.constant dense<0.000000e+00> : vector<8x32xf32>
    %108 = tpu.matmul %106, %85, %cst_89 {dimension_numbers = #tpu.dot_dimension_numbers<[1], [0], [0], [1], [0, 0, 1, 1], [], []>} : vector<8x32xf32>, vector<32x32xf32>, vector<8x32xf32> -> vector<8x32xf32>
    %109 = arith.addf %107, %108 : vector<8x32xf32>
    %110 = math.tanh %109 : vector<8x32xf32>
    %111 = vector.extract_strided_slice %84 {offsets = [48, 0], sizes = [8, 32], strides = [1, 1]} : vector<64x32xf32> to vector<8x32xf32>
    %cst_90 = arith.constant dense<0.000000e+00> : vector<8x32xf32>
    %112 = tpu.matmul %110, %85, %cst_90 {dimension_numbers = #tpu.dot_dimension_numbers<[1], [0], [0], [1], [0, 0, 1, 1], [], []>} : vector<8x32xf32>, vector<32x32xf32>, vector<8x32xf32> -> vector<8x32xf32>
    %113 = arith.addf %111, %112 : vector<8x32xf32>
    %114 = math.tanh %113 : vector<8x32xf32>
    %115 = vector.extract_strided_slice %84 {offsets = [56, 0], sizes = [8, 32], strides = [1, 1]} : vector<64x32xf32> to vector<8x32xf32>
    %cst_91 = arith.constant dense<0.000000e+00> : vector<8x32xf32>
    %116 = tpu.matmul %114, %85, %cst_91 {dimension_numbers = #tpu.dot_dimension_numbers<[1], [0], [0], [1], [0, 0, 1, 1], [], []>} : vector<8x32xf32>, vector<32x32xf32>, vector<8x32xf32> -> vector<8x32xf32>
    %117 = arith.addf %115, %116 : vector<8x32xf32>
    %118 = math.tanh %117 : vector<8x32xf32>
    %119 = vector.extract_strided_slice %118 {offsets = [0, 0], sizes = [2, 32], strides = [1, 1]} : vector<8x32xf32> to vector<2x32xf32>
    %c0_92 = arith.constant 0 : index
    %c0_93 = arith.constant 0 : index
    %120 = vector.load %arg4[%c0_92, %c0_93] : memref<2x32xf32, #tpu.memory_space<vmem>>, vector<2x32xf32>
    tpu.vector_store %arg4[%c0_92, %c0_93], %119 {strides = array<i32>} : memref<2x32xf32, #tpu.memory_space<vmem>>, vector<2x32xf32>,
    return
  }
}

</mosaic_0001>

<bundles_post_ra>
// kernel: my_module_forward.1
= control target key start
LH: loop header
LB: loop body
LE: loop exit
PB: predicated region body
PF: predicated region fallthrough
CT: control target
= control target key end

     0   :  { %9 = vsyncpa [#allocation6], 0  ;;  %s1505_s0 = inlined_call_operand.vmem [shape: s32[2,8], index: 0, kind: input, shape index: {}]   ;;  %s1506_s1 = inlined_call_operand.hbm [shape: f32[20,1,32], index: 1, kind: input, shape index: {}]   ;;  %s1507_s2 = inlined_call_operand.hbm [shape: f32[32,32], index: 2, kind: input, shape index: {}]   ;;  %s1508_s3 = inlined_call_operand.hbm [shape: f32[32,32], index: 3, kind: input, shape index: {}]   ;;  %s1509_s4 = inlined_call_operand.hbm [shape: f32[2,32], index: 4, kind: output, shape index: {}]  }
   0x1   :  { %10 = vsyncpa [#allocation4], 0 }
   0x2   :  { %11 = vsyncpa [#allocation9], 0 }
   0x3   :  { %12 = vsyncpa [#allocation5], 0  ;;  %s1308_s15 = smov [#allocation8]   ;;  %s19_s19 = sshll.u32 %s1505_s0, 4  ;;  %s20_s19 = int_to_ptr.vmem [resolvable:$true] %s19_s19 }
   0x4   :  { %s40_s16 = sshll.u32 %s1308_s15, 4  ;;  %s1200_s22 = scalar_lea.hbm %s1507_s2, 512  ;;  %s41_s16 = int_to_ptr.vmem [resolvable:$true] %s40_s16 }
   0x5   :  { %p1201_p0 = scmp.ne.s32.totalorder %s1507_s2, %s1200_s22  ;;  %p1204_p1 = scmp.lt.u32.totalorder %s1200_s22, %s1507_s2 }
   0x7   :  { %p1206_p2 = pnand %p1204_p1, %p1201_p0 }
   0x9   :  { %1209 = shalt.err (!%p1206_p2)
}
   0xa   :  { %s1210_s27 = scalar_lea.vmem %s41_s16, 512  ;;  %p1215_p4 = scmp.lt.s32.totalorder %s41_s16, %s41_s16 }
   0xb   :  { %p1211_p3 = scmp.ne.s32.totalorder %s41_s16, %s1210_s27  ;;  %p1216_p5 = scmp.lt.s32.totalorder %s1210_s27, %s1210_s27 }
   0xd   :  { %p1217_p6 = por %p1216_p5, %p1215_p4 }
   0xf   :  { %p1218_p7 = pnand %p1217_p6, %p1211_p3 }
  0x11   :  { %1221 = shalt.err (!%p1218_p7)
}
  0x12   :  { %s1309_s0 = smov 128   ;;  %s1310_s28 = smov 8  }
  0x13   :  { %46 = dma.hbm_to_vmem [thread:$0]  %s1507_s2, 512, %s41_s16, [#allocation9], %s1309_s0, %s1309_s0, %s1310_s28  }
  0x14   :  { %s1222_s5 = scalar_lea.vmem %s20_s19, 32  ;;  %p1227_p9 = scmp.lt.s32.totalorder %s20_s19, %s20_s19 }
  0x15   :  { %p1223_p8 = scmp.ne.s32.totalorder %s20_s19, %s1222_s5  ;;  %p1228_p10 = scmp.lt.s32.totalorder %s1222_s5, %s1222_s5 }
  0x17   :  { %p1229_p11 = por %p1228_p10, %p1227_p9 }
  0x19   :  { %p1230_p12 = pnand %p1229_p11, %p1223_p8 }
  0x1b   :  { %1233 = shalt.err (!%p1230_p12)
}
  0x1c   :  { %s1311_s6 = smov [#allocation3]   ;;  %s1312_s7 = smov [#allocation7]  }
  0x1d   :  { %22 = dma.vmem_to_smem %s20_s19, 32, %s1311_s6, [#allocation6]  }
  0x1e   :  { %s28_s8 = sshll.u32 %s1312_s7, 4  ;;  %s1234_s11 = scalar_lea.hbm %s1506_s1, 320  ;;  %s29_s8 = int_to_ptr.vmem [resolvable:$true] %s28_s8 }
  0x1f   :  { %p1235_p13 = scmp.ne.s32.totalorder %s1506_s1, %s1234_s11  ;;  %p1238_p0 = scmp.lt.u32.totalorder %s1234_s11, %s1506_s1 }
  0x21   :  { %p1240_p1 = pnand %p1238_p0, %p1235_p13 }
  0x23   :  { %1243 = shalt.err (!%p1240_p1)
}
  0x24   :  { %s1244_s15 = scalar_lea.vmem %s29_s8, 320  ;;  %p1249_p3 = scmp.lt.s32.totalorder %s29_s8, %s29_s8 }
  0x25   :  { %p1245_p2 = scmp.ne.s32.totalorder %s29_s8, %s1244_s15  ;;  %p1250_p4 = scmp.lt.s32.totalorder %s1244_s15, %s1244_s15 }
  0x27   :  { %p1251_p5 = por %p1250_p4, %p1249_p3 }
  0x29   :  { %p1252_p6 = pnand %p1251_p5, %p1245_p2 }
  0x2b   :  { %1255 = shalt.err (!%p1252_p6)
}
  0x2c   :  { %s1313_s16 = smov 16   ;;  %s1314_s17 = smov 1  }
  0x2d   :  { %34 = dma.hbm_to_vmem [thread:$0]  %s1506_s1, 320, %s29_s8, [#allocation4], %s1313_s16, %s1313_s16, %s1314_s17  }
  0x2e   :  { %s1315_s20 = smov [#allocation10]   ;;  %s1256_s24 = scalar_lea.hbm %s1508_s3, 512 }
  0x2f   :  { %s52_s21 = sshll.u32 %s1315_s20, 4  ;;  %p1257_p7 = scmp.ne.s32.totalorder %s1508_s3, %s1256_s24  ;;  %s53_s21 = int_to_ptr.vmem [resolvable:$true] %s52_s21 }
  0x30   :  { %p1260_p8 = scmp.lt.u32.totalorder %s1256_s24, %s1508_s3 }
  0x32   :  { %p1262_p9 = pnand %p1260_p8, %p1257_p7 }
  0x34   :  { %1265 = shalt.err (!%p1262_p9)
}
  0x35   :  { %s1266_s30 = scalar_lea.vmem %s53_s21, 512  ;;  %p1271_p11 = scmp.lt.s32.totalorder %s53_s21, %s53_s21 }
  0x36   :  { %p1267_p10 = scmp.ne.s32.totalorder %s53_s21, %s1266_s30  ;;  %p1272_p12 = scmp.lt.s32.totalorder %s1266_s30, %s1266_s30 }
  0x38   :  { %p1273_p13 = por %p1272_p12, %p1271_p11 }
  0x3a   :  { %p1274_p0 = pnand %p1273_p13, %p1267_p10 }
  0x3c   :  { %1277 = shalt.err (!%p1274_p0)
}
  0x3d   :  { %58 = dma.hbm_to_vmem [thread:$0]  %s1508_s3, 512, %s53_s21, [#allocation9], %s1309_s0, %s1309_s0, %s1310_s28  }
  0x3e   :  { %1300 = dma.done.wait [#allocation6], 32  }
  0x3f   :  { %1301 = vsyncadd [#allocation6], 4294967264 }
  0x40   :  { %1302 = dma.done.wait [#allocation4], 320  }
  0x41   :  { %1303 = vsyncadd [#allocation4], 4294966976 }
  0x42   :  { %1304 = dma.done.wait [#allocation9], 1024  }
  0x43   :  { %1305 = vsyncadd [#allocation9], 4294966272 }
  0x44   :  { %71 = sfence }
  0x45   :  { %v154_v0 = vld [vmem:[#allocation8] sm:$0xff]  ;;  %v155_v1 = vld [vmem:[#allocation8 + $0x8] sm:$0xff]  ;;  %vm72_vm0 = vcmask 261120   ;;  %v1316_v4 = vmov 0.0|0.0   ;;  %v156_v6 = vld [vmem:[#allocation8 + $0x10] sm:$0xff]  ;;  %v1317_v8 = vmov 0.0  }
  0x46   :  { %v287_v2 = vld [vmem:[#allocation10] sm:$0xff]  ;;  %v1116_v3 = vpack.c.bf16 %v155_v1, %v154_v0  ;;  %1124 = vmatprep.subr.bf16.mxu1 %v1316_v4  ;;  %v288_v5 = vld [vmem:[#allocation10 + $0x8] sm:$0xff]  ;;  %v157_v7 = vld [vmem:[#allocation8 + $0x18] sm:$0xff]  ;;  %73 = vst.msk [vmem:[#allocation2] sm:$0xff] %vm72_vm0, %v1317_v8  ;;  %s81_s3 = sld [smem:[#allocation3]]  ;;  %vm1318_vm1 = vmmov 0  }
  0x47   :  { %74 = vst.msk [vmem:[#allocation2 + $0x8] sm:$0xff] %vm72_vm0, %v1317_v8  ;;  %75 = vst.msk [vmem:[#allocation2 + $0x10] sm:$0xff] %vm72_vm0, %v1317_v8  ;;  %v1407_v9 = vpack.c.bf16 %v288_v5, %v287_v2  ;;  %v1120_v10 = vpack.c.bf16 %v157_v7, %v156_v6  ;;  %v289_v11 = vld [vmem:[#allocation10 + $0x10] sm:$0xff]  ;;  %v290_v12 = vld [vmem:[#allocation10 + $0x18] sm:$0xff]  ;;  %s926_s0 = sld [smem:[#allocation3 + $0x80]]  ;;  %1036 = vmatprep.mubr.msk.f32.mxu1 %vm1318_vm1, %v1317_v8  ;;  %s927_s28 = sld [smem:[#allocation3 + $0x1]] }
  0x48   :  { %76 = vst.msk [vmem:[#allocation2 + $0x18] sm:$0xff] %vm72_vm0, %v1317_v8  ;;  %77 = vst.msk [vmem:[#allocation2 + $0x20] sm:$0xff] %vm72_vm0, %v1317_v8  ;;  %1117 = vmatprep.subr.bf16.mxu0 %v1116_v3  ;;  %s928_s6 = sld [smem:[#allocation3 + $0x81]]  ;;  %v1412_v13 = vpack.c.bf16 %v290_v12, %v289_v11  ;;  %vm84_vm2 = vcmask 253952   ;;  %s929_s11 = sld [smem:[#allocation3 + $0x2]]  ;;  %vm891_vm3 = vcmask 254976  }
  0x49   :  { %78 = vst.msk [vmem:[#allocation2 + $0x28] sm:$0xff] %vm72_vm0, %v1317_v8  ;;  %79 = vst.msk [vmem:[#allocation2 + $0x30] sm:$0xff] %vm72_vm0, %v1317_v8  ;;  %1119 = vmatpush3.bf16.msra.mxu0 %v1116_v3  ;;  %1126 = vmatpush3.bf16.msra.mxu1 %v1407_v9  ;;  %s930_s12 = sld [smem:[#allocation3 + $0x82]]  ;;  %s931_s14 = sld [smem:[#allocation3 + $0x3]] }
  0x4a   :  { %80 = vst.msk [vmem:[#allocation2 + $0x38] sm:$0xff] %vm72_vm0, %v1317_v8  ;;  %1121 = vmatprep.subr.bf16.mxu0 %v1120_v10  ;;  %1127 = vmatprep.subr.bf16.mxu1 %v1316_v4  ;;  %s932_s15 = sld [smem:[#allocation3 + $0x83]]  ;;  %s933_s16 = sld [smem:[#allocation3 + $0x4]] }
  0x4b   :  { %s934_s17 = sld [smem:[#allocation3 + $0x84]]  ;;  %s935_s18 = sld [smem:[#allocation3 + $0x5]] }
  0x4c   :  { %s82_s7 = scalar_lea.vmem [#allocation7], %s81_s3  ;;  %s936_s19 = sld [smem:[#allocation3 + $0x85]] }
  0x4d   :  { %1123 = vmatpush3.bf16.msra.mxu0 %v1120_v10  ;;  %1129 = vmatpush3.bf16.msra.mxu1 %v1412_v13  ;;  %v83_v14 = vld [vmem:[%s82_s7] sm:$0x1]  ;;  %s87_s8 = scalar_lea.vmem [#allocation7], %s926_s0  ;;  %s91_s9 = scalar_lea.vmem [#allocation7], %s927_s28 }
  0x4e   :  { %85 = vst.msk [vmem:[#allocation2] sm:$0x1] %vm84_vm2, %v83_v14  ;;  %v88_v15 = vld [vmem:[%s87_s8] sm:$0x1]  ;;  %1130 = vmatprep.subr.bf16.mxu1 %v1316_v4  ;;  %1136 = vmatprep.subr.bf16.mxu0 %v1316_v4  ;;  %s95_s10 = scalar_lea.vmem [#allocation7], %s928_s6  ;;  %s99_s13 = scalar_lea.vmem [#allocation7], %s929_s11 }
  0x4f   :  { %89 = vst.msk [vmem:[#allocation2 + $0x1] sm:$0x1] %vm84_vm2, %v88_v15  ;;  %v92_v16 = vld [vmem:[%s91_s9] sm:$0x1]  ;;  %s103_s2 = scalar_lea.vmem [#allocation7], %s930_s12  ;;  %s107_s20 = scalar_lea.vmem [#allocation7], %s931_s14 }
  0x50   :  { %v96_v17 = vld [vmem:[%s95_s10] sm:$0x1]  ;;  %93 = vst.msk [vmem:[#allocation2 + $0x8] sm:$0x1] %vm84_vm2, %v92_v16  ;;  %1037 = vmatmul.mubr.f32.vlgmr.msra.gmra.mrb[0].mxu1 %v1317_v8  ;;  %s111_s21 = scalar_lea.vmem [#allocation7], %s932_s15  ;;  %s937_s22 = sld [smem:[#allocation3 + $0x6]] }
  0x51   :  { %97 = vst.msk [vmem:[#allocation2 + $0x9] sm:$0x1] %vm84_vm2, %v96_v17  ;;  %1132 = vmatpush3.bf16.msra.mxu1 %v1407_v9  ;;  %1047 = vmatprep.mubr.msk.f32.mxu1 %vm1318_vm1, %v1317_v8  ;;  %v100_v20 = vld [vmem:[%s99_s13] sm:$0x1]  ;;  %s938_s23 = sld [smem:[#allocation3 + $0x86]]  ;;  %s939_s24 = sld [smem:[#allocation3 + $0x7]] }
  0x52   :  { %1133 = vmatprep.subr.bf16.mxu1 %v1316_v4  ;;  %v104_v21 = vld [vmem:[%s103_s2] sm:$0x1]  ;;  %101 = vst.msk [vmem:[#allocation2 + $0x10] sm:$0x1] %vm84_vm2, %v100_v20  ;;  %s115_s25 = scalar_lea.vmem [#allocation7], %s933_s16  ;;  %s119_s26 = scalar_lea.vmem [#allocation7], %s934_s17 }
  0x53   :  { %105 = vst.msk [vmem:[#allocation2 + $0x11] sm:$0x1] %vm84_vm2, %v104_v21  ;;  %v108_v29 = vld [vmem:[%s107_s20] sm:$0x1]  ;;  %s123_s27 = scalar_lea.vmem [#allocation7], %s935_s18  ;;  %s127_s29 = scalar_lea.vmem [#allocation7], %s936_s19 }
  0x54   :  { %v112_v30 = vld [vmem:[%s111_s21] sm:$0x1]  ;;  %109 = vst.msk [vmem:[#allocation2 + $0x18] sm:$0x1] %vm84_vm2, %v108_v29  ;;  %s940_s30 = sld [smem:[#allocation3 + $0x87]]  ;;  %s1319_s28 = smov [#allocation11]  }
  0x55   :  { %1135 = vmatpush3.bf16.msra.mxu1 %v1412_v13  ;;  %113 = vst.msk [vmem:[#allocation2 + $0x19] sm:$0x1] %vm84_vm2, %v112_v30  ;;  %v116_v31 = vld [vmem:[%s115_s25] sm:$0x1]  ;;  %s899_s6 = sshll.u32 %s1319_s28, 4  ;;  %s900_s6 = int_to_ptr.vmem [resolvable:$true] %s899_s6 }
  0x56   :  { %v146_v18 = vld [vmem:[#allocation2] sm:$0xff]  ;;  %1142 = vmatprep.subr.bf16.mxu1 %v1316_v4  ;;  %117 = vst.msk [vmem:[#allocation2 + $0x20] sm:$0x1] %vm84_vm2, %v116_v31  ;;  %s131_s1 = scalar_lea.vmem [#allocation7], %s937_s22  ;;  %s1278_s7 = scalar_lea.vmem %s900_s6, 32 }
  0x57   :  { %1016 = vmatprep.mubr.msk.f32.mxu0 %vm72_vm0, %v146_v18  ;;  %v120_v32 = vld [vmem:[%s119_s26] sm:$0x1]  ;;  %s135_s5 = scalar_lea.vmem [#allocation7], %s938_s23  ;;  %s139_s3 = scalar_lea.vmem [#allocation7], %s939_s24 }
  0x58   :  { %v147_v19 = vld [vmem:[#allocation2 + $0x8] sm:$0xff]  ;;  %121 = vst.msk [vmem:[#allocation2 + $0x21] sm:$0x1] %vm84_vm2, %v120_v32  ;;  %v124_v33 = vld [vmem:[%s123_s27] sm:$0x1]  ;;  %p1279_p1 = scmp.ne.s32.totalorder %s900_s6, %s1278_s7  ;;  %p1283_p2 = scmp.lt.s32.totalorder %s900_s6, %s900_s6 }
  0x59   :  { %1017 = vmatmul.mubr.msk.f32.vlgmr.msra.gmra.mrb[0].mxu0 %vm72_vm0, %v147_v19  ;;  %v128_v34 = vld [vmem:[%s127_s29] sm:$0x1]  ;;  %125 = vst.msk [vmem:[#allocation2 + $0x28] sm:$0x1] %vm84_vm2, %v124_v33  ;;  %p1284_p3 = scmp.lt.s32.totalorder %s1278_s7, %s1278_s7 }
  0x5a   :  { %1138 = vmatpush3.bf16.msra.mxu0 %v1407_v9  ;;  %v148_v22 = vld [vmem:[#allocation2 + $0x10] sm:$0xff]  ;;  %129 = vst.msk [vmem:[#allocation2 + $0x29] sm:$0x1] %vm84_vm2, %v128_v34  ;;  %v132_v35 = vld [vmem:[%s131_s1] sm:$0x1]  ;;  %s143_s0 = scalar_lea.vmem [#allocation7], %s940_s30 }
  0x5b   :  { %1139 = vmatprep.subr.bf16.mxu0 %v1316_v4  ;;  %1019 = vmatprep.mubr.msk.f32.mxu0 %vm72_vm0, %v148_v22  ;;  %133 = vst.msk [vmem:[#allocation2 + $0x30] sm:$0x1] %vm84_vm2, %v132_v35  ;;  %v136_v37 = vld [vmem:[%s135_s5] sm:$0x1]  ;;  %p1285_p4 = por %p1284_p3, %p1283_p2 }
  0x5c   :  { %v149_v36 = vld [vmem:[#allocation2 + $0x18] sm:$0xff]  ;;  %v140_v38 = vld [vmem:[%s139_s3] sm:$0x1]  ;;  %137 = vst.msk [vmem:[#allocation2 + $0x31] sm:$0x1] %vm84_vm2, %v136_v37 }
  0x5d   :  { %1020 = vmatmul.mubr.msk.f32.gmra.mrb[2].mxu0 %vm72_vm0, %v149_v36  ;;  %141 = vst.msk [vmem:[#allocation2 + $0x38] sm:$0x1] %vm84_vm2, %v140_v38  ;;  %v144_v40 = vld [vmem:[%s143_s0] sm:$0x1]  ;;  %p1286_p5 = pnand %p1285_p4, %p1279_p1 }
  0x5e   :  { %1141 = vmatpush3.bf16.msra.mxu0 %v1412_v13  ;;  %145 = vst.msk [vmem:[#allocation2 + $0x39] sm:$0x1] %vm84_vm2, %v144_v40 }
  0x5f   :  { %1148 = vmatprep.subr.bf16.mxu0 %v1316_v4  ;;  %v150_v39 = vld [vmem:[#allocation2 + $0x20] sm:$0xff] }
  0x60   :  { %1022 = vmatprep.mubr.msk.f32.mxu0 %vm72_vm0, %v150_v39 }
  0x61   :  { %v151_v41 = vld [vmem:[#allocation2 + $0x28] sm:$0xff] }
  0x62   :  { %1023 = vmatmul.mubr.msk.f32.gmra.mrb[4].mxu0 %vm72_vm0, %v151_v41 }
  0x63   :  { %v152_v42 = vld [vmem:[#allocation2 + $0x30] sm:$0xff] }
  0x64   :  { %1025 = vmatprep.mubr.msk.f32.mxu0 %vm72_vm0, %v152_v42 }
  0x65   :  { %v153_v43 = vld [vmem:[#allocation2 + $0x38] sm:$0xff] }
  0x66   :  { %1026 = vmatmul.mubr.msk.f32.gmra.mrb[6].mxu0 %vm72_vm0, %v153_v43 }
  0x67   :  { %1058 = vmatprep.mubr.msk.f32.mxu0 %vm1318_vm1, %v1317_v8 }
 0x123   :  { %v360_v23 = vpop.f32.mrb[0].mxu1 }
 0x124   :  { %v1038_v24 = vpop.f32.mrb[1].mxu1 }
 0x12c   :  { %v1438_v25 = vpop.f32.mrb[0].mxu0 }
 0x12d   :  { %v248_v26 = vpop.f32.mrb[1].mxu0 }
 0x12e   :  { %v364_v27 = vadd.f32 %v360_v23, %v248_v26 }
 0x130   :  { %1184 = vtanh.f32 %v364_v27  ;;  %v1021_v48 = vpop.f32.mrb[2].mxu0 }
 0x131   :  { %v258_v49 = vpop.f32.mrb[3].mxu0 }
 0x135   :  { %v1024_v50 = vpop.f32.mrb[4].mxu0 }
 0x136   :  { %v268_v51 = vpop.f32.mrb[5].mxu0 }
 0x139   :  { %v1027_v52 = vpop.f32.mrb[6].mxu0 }
 0x13a   :  { %v1185_v28 = vpop.eup %1184  ;;  %v278_v53 = vpop.f32.mrb[7].mxu0 }
 0x13b   :  { %1048 = vmatmul.mubr.msk.f32.vlgmr.msra.gmra.mrb[2].mxu1 %vm72_vm0, %v1185_v28 }
 0x13c   :  { %1144 = vmatpush3.bf16.msra.mxu1 %v1407_v9  ;;  %1069 = vmatprep.mubr.msk.f32.mxu1 %vm1318_vm1, %v1317_v8 }
 0x13d   :  { %1145 = vmatprep.subr.bf16.mxu1 %v1316_v4 }
 0x140   :  { %1147 = vmatpush3.bf16.msra.mxu1 %v1412_v13 }
 0x141   :  { %1154 = vmatprep.subr.bf16.mxu1 %v1316_v4 }
 0x20e   :  { %v435_v44 = vpop.f32.mrb[2].mxu1 }
 0x20f   :  { %v439_v45 = vadd.f32 %v1438_v25, %v435_v44  ;;  %v1049_v46 = vpop.f32.mrb[3].mxu1 }
 0x211   :  { %1186 = vtanh.f32 %v439_v45 }
 0x21b   :  { %v1187_v47 = vpop.eup %1186 }
 0x21c   :  { %1059 = vmatmul.mubr.msk.f32.vlgmr.msra.gmra.mrb[8].mxu0 %vm72_vm0, %v1187_v47 }
 0x21d   :  { %1150 = vmatpush3.bf16.msra.mxu0 %v1407_v9  ;;  %1080 = vmatprep.mubr.msk.f32.mxu0 %vm1318_vm1, %v1317_v8 }
 0x21e   :  { %1151 = vmatprep.subr.bf16.mxu0 %v1316_v4 }
 0x221   :  { %1153 = vmatpush3.bf16.msra.mxu0 %v1412_v13 }
 0x222   :  { %1160 = vmatprep.subr.bf16.mxu0 %v1316_v4 }
 0x2ef   :  { %v510_v54 = vpop.f32.mrb[8].mxu0 }
 0x2f0   :  { %v514_v55 = vadd.f32 %v510_v54, %v258_v49  ;;  %v1060_v56 = vpop.f32.mrb[9].mxu0 }
 0x2f2   :  { %1188 = vtanh.f32 %v514_v55 }
 0x2fc   :  { %v1189_v57 = vpop.eup %1188 }
 0x2fd   :  { %1070 = vmatmul.mubr.msk.f32.vlgmr.msra.gmra.mrb[4].mxu1 %vm72_vm0, %v1189_v57 }
 0x2fe   :  { %1156 = vmatpush3.bf16.msra.mxu1 %v1407_v9  ;;  %1091 = vmatprep.mubr.msk.f32.mxu1 %vm1318_vm1, %v1317_v8 }
 0x2ff   :  { %1157 = vmatprep.subr.bf16.mxu1 %v1316_v4 }
 0x302   :  { %1159 = vmatpush3.bf16.msra.mxu1 %v1412_v13 }
 0x303   :  { %1166 = vmatprep.subr.bf16.mxu1 %v1316_v4 }
 0x3d0   :  { %v585_v58 = vpop.f32.mrb[4].mxu1 }
 0x3d1   :  { %v589_v59 = vadd.f32 %v1021_v48, %v585_v58  ;;  %v1071_v60 = vpop.f32.mrb[5].mxu1 }
 0x3d3   :  { %1190 = vtanh.f32 %v589_v59 }
 0x3dd   :  { %v1191_v61 = vpop.eup %1190 }
 0x3de   :  { %1081 = vmatmul.mubr.msk.f32.vlgmr.msra.gmra.mrb[10].mxu0 %vm72_vm0, %v1191_v61 }
 0x3df   :  { %1162 = vmatpush3.bf16.msra.mxu0 %v1407_v9  ;;  %1102 = vmatprep.mubr.msk.f32.mxu0 %vm1318_vm1, %v1317_v8 }
 0x3e0   :  { %1163 = vmatprep.subr.bf16.mxu0 %v1316_v4 }
 0x3e3   :  { %1165 = vmatpush3.bf16.msra.mxu0 %v1412_v13 }
 0x4b1   :  { %v660_v62 = vpop.f32.mrb[10].mxu0 }
 0x4b2   :  { %v664_v63 = vadd.f32 %v660_v62, %v268_v51  ;;  %v1082_v0 = vpop.f32.mrb[11].mxu0 }
 0x4b4   :  { %1192 = vtanh.f32 %v664_v63 }
 0x4be   :  { %v1193_v1 = vpop.eup %1192 }
 0x4bf   :  { %1092 = vmatmul.mubr.msk.f32.vlgmr.msra.gmra.mrb[6].mxu1 %vm72_vm0, %v1193_v1 }
 0x4c0   :  { %1168 = vmatpush3.bf16.msra.mxu1 %v1407_v9  ;;  %1113 = vmatprep.mubr.msk.f32.mxu1 %vm1318_vm1, %v1317_v8 }
 0x4c1   :  { %1169 = vmatprep.subr.bf16.mxu1 %v1316_v4 }
 0x4c4   :  { %1171 = vmatpush3.bf16.msra.mxu1 %v1412_v13 }
 0x592   :  { %v735_v2 = vpop.f32.mrb[6].mxu1 }
 0x593   :  { %v739_v3 = vadd.f32 %v1024_v50, %v735_v2  ;;  %v1093_v5 = vpop.f32.mrb[7].mxu1 }
 0x595   :  { %1194 = vtanh.f32 %v739_v3 }
 0x59f   :  { %v1195_v6 = vpop.eup %1194 }
 0x5a0   :  { %1103 = vmatmul.mubr.msk.f32.vlgmr.msra.gmra.mrb[12].mxu0 %vm72_vm0, %v1195_v6 }
 0x673   :  { %v810_v7 = vpop.f32.mrb[12].mxu0 }
 0x674   :  { %v814_v10 = vadd.f32 %v810_v7, %v278_v53  ;;  %v1104_v11 = vpop.f32.mrb[13].mxu0 }
 0x676   :  { %1196 = vtanh.f32 %v814_v10 }
 0x680   :  { %v1197_v12 = vpop.eup %1196 }
 0x681   :  { %1114 = vmatmul.mubr.msk.f32.vlgmr.msra.gmra.mrb[8].mxu1 %vm72_vm0, %v1197_v12 }
 0x754   :  { %v885_v9 = vpop.f32.mrb[8].mxu1 }
 0x755   :  { %v889_v8 = vadd.f32 %v1027_v52, %v885_v9  ;;  %v1115_v14 = vpop.f32.mrb[9].mxu1 }
 0x757   :  { %1198 = vtanh.f32 %v889_v8 }
 0x761   :  { %v1199_v4 = vpop.eup %1198 }
 0x762   :  { %892 = vst.msk [vmem:[#allocation11] sm:$0x3] %vm891_vm3, %v1199_v4 }
 0x763   :  { %1289 = shalt.err (!%p1286_p5)
}
 0x764   :  { %s1290_s10 = scalar_lea.hbm %s1509_s4, 32 }
 0x765   :  { %p1291_p6 = scmp.ne.s32.totalorder %s1509_s4, %s1290_s10  ;;  %p1294_p7 = scmp.lt.u32.totalorder %s1290_s10, %s1509_s4 }
 0x767   :  { %p1296_p8 = pnand %p1294_p7, %p1291_p6 }
 0x769   :  { %1299 = shalt.err (!%p1296_p8)
}
 0x76a   :  { %902 = dma.vmem_to_hbm [thread:$0]  %s900_s6, 32, %s1509_s4, [#allocation5]  }
 0x76b   :  { %1306 = dma.done.wait [#allocation5], 32  }
 0x76c   :  { %1307 = vsyncadd [#allocation5], 4294967264 }
 0x76d   :  { %906 = vsyncpa [#allocation4], 1 }
 0x76e   :  { %907 = vsyncpa [#allocation9], 1 }
 0x76f   :  { %908 = vsyncpa [#allocation5], 1 }
 0x770   :  { %909 = vsyncpa [#allocation6], 1 }

</bundles_post_ra>
